<compile_context>
chip_gen: v6e
topology: v6e:2x2x1
jax: 0.10.0
libtpu: 0.0.40
codegen_flags: <defaults>
</compile_context>

<pallas_src>
import functools

import jax
import jax.numpy as jnp
from jax.experimental import pallas as pl
from jax.experimental.pallas import tpu as pltpu


def _silu(y):
    # y * sigmoid(y).  exp() runs on the EUP; the divide uses the *exact*
    # reciprocal (also EUP, nearly free) — the bf16 MXU operands are the
    # dominant error source already, so don't add approx-recip error on top.
    return y * pl.reciprocal(1.0 + jnp.exp(-y))


def _conv3x3_silu(src, w, b, masks, *, W, CP, LANES):
    """3x3 SAME conv + bias + SiLU on a flat (CP, LANES) f32 slab.

    LANES = (images in block) * H * W; each image occupies a contiguous run
    of H*W lanes.  The 9 conv taps are lane rotations of `src` (XLU) with
    precomputed validity masks zeroing image borders (which also kills any
    cross-image / wrap-around contamination from the rotation).
    """
    taps = []
    t = 0
    for oy in (-1, 0, 1):
        # One vertical rotation per row offset; the ox = +-1 taps are derived
        # from it -> 8 rolls per conv total, all on the otherwise-idle XLU.
        row = pltpu.roll(src, shift=(-oy * W) % LANES, axis=1) if oy else src
        for ox in (-1, 0, 1):
            tap = pltpu.roll(row, shift=(-ox) % LANES, axis=1) if ox else row
            if t != 4:                          # centre tap is always valid
                tap = tap * masks[t:t + 1, :]   # masks hoisted by the caller
            taps.append(tap)
            t += 1

    if CP >= 128:
        # Production channel counts: never materialise the 9x im2col operand;
        # accumulate 9 per-tap matmuls (K = CP already fills the MXU).
        acc = None
        for tt, tap in enumerate(taps):
            part = jnp.dot(w[:, tt * CP:(tt + 1) * CP], tap.astype(w.dtype),
                           preferred_element_type=jnp.float32)
            acc = part if acc is None else acc + part
    else:
        # Tiny CP (this demo): one matmul with K = 9*CP fills the MXU better.
        # The operand is a value (no scratch ref -> no extra store+load pass);
        # f32 pieces concatenate on exact sublane tiles and the single bf16
        # cast at the matmul boundary costs the same VALU work as nine
        # per-tap casts.
        patch = jnp.concatenate(taps, axis=0)              # (9*CP, LANES) f32
        acc = jnp.dot(w, patch.astype(w.dtype),
                      preferred_element_type=jnp.float32)  # (CP, LANES) f32

    return _silu(acc + b)


def bottleneck_kernel(x_ref, w1_ref, b1_ref, w2_ref, b2_ref, mask_ref, o_ref,
                      *, W, CP, LANES):
    # x_ref   : (CP, LANES) f32   channels (padded to the 8-row sublane tile)
    #                             x flattened (n, h, w) lanes
    # w*_ref  : (CP, 9*CP)  bf16  im2col-packed, BN-folded conv weights
    # b*_ref  : (CP, 1)     f32   BN-folded biases
    # mask_ref: (9, LANES)  f32   per-tap border-validity masks
    # o_ref   : (CP, LANES) f32
    x = x_ref[...]
    masks = mask_ref[...]          # hoisted: loaded once, sliced as values
    w1 = w1_ref[...]
    b1 = b1_ref[...]
    w2 = w2_ref[...]
    b2 = b2_ref[...]

    y1 = _conv3x3_silu(x, w1, b1, masks, W=W, CP=CP, LANES=LANES)
    y2 = _conv3x3_silu(y1, w2, b2, masks, W=W, CP=CP, LANES=LANES)

    # Residual shortcut (c1 == c2).  Padded channel rows are exactly zero on
    # both sides, so this is a full lane- and sublane-dense store.
    o_ref[...] = (x + y2).astype(o_ref.dtype)


def _const_spec(shape):
    """BlockSpec for grid-invariant operands (weights / biases / masks).

    Single-buffered when this jax version supports pipeline_mode: the block
    never changes across the grid, so double-buffering it is pure VMEM waste
    (multi-MiB at production CP on v7x's 64 MiB VMEM).
    """
    index_map = lambda b: (0,) * len(shape)
    try:
        return pl.BlockSpec(shape, index_map, pipeline_mode=pl.Buffered(1))
    except Exception:                 # pragma: no cover — older jax fallback
        return pl.BlockSpec(shape, index_map)


def bottleneck_pallas(x_nchw, w1_hwio, b1, w2_hwio, b2, *,
                      images_per_step=None, matmul_dtype=jnp.bfloat16):
    """Bottleneck forward.  x_nchw: (N, C1, H, W); weights HWIO, BN folded."""
    N, C1, H, W = x_nchw.shape
    C_ = w1_hwio.shape[-1]
    C2 = w2_hwio.shape[-1]
    assert C1 == C2, "shortcut requires c1 == c2"
    HW = H * W
    CP = ((max(C1, C_, C2) + 7) // 8) * 8     # channels -> 8-row sublane tile

    # Whole batch folded into one step by default (each demo step is fixed-
    # overhead bound and 2 images double the RHS lane width to 512).  Set
    # images_per_step=1 on v7x if you deliberately want one step per core.
    NB = N if images_per_step is None else images_per_step
    assert N % NB == 0
    LANES = NB * HW
    assert (LANES % 128 == 0) or (N == NB), "lane blocks must be 128-aligned"

    def pack_weight(w_hwio, cin):
        cout = w_hwio.shape[-1]
        w = jnp.pad(w_hwio, ((0, 0), (0, 0), (0, CP - cin), (0, CP - cout)))
        # (ky, kx, cin, cout) -> (cout, ky, kx, cin) -> (CP, 9*CP); column
        # order matches the kernel's tap order (oy, ox, cin).
        return jnp.transpose(w, (3, 0, 1, 2)).reshape(CP, 9 * CP).astype(
            matmul_dtype)

    w1m = pack_weight(w1_hwio, C1)
    w2m = pack_weight(w2_hwio, C_)
    b1p = jnp.pad(b1, (0, CP - C_)).reshape(CP, 1).astype(jnp.float32)
    b2p = jnp.pad(b2, (0, CP - C2)).reshape(CP, 1).astype(jnp.float32)

    # Per-tap border-validity masks over one lane block (identical for every
    # block since every image occupies a contiguous HW run of lanes).
    lane = jnp.arange(LANES, dtype=jnp.int32)
    p = lane % HW
    hh = p // W
    ww = p % W
    rows = []
    for oy in (-1, 0, 1):
        rok = jnp.logical_and(hh + oy >= 0, hh + oy <= H - 1)
        for ox in (-1, 0, 1):
            cok = jnp.logical_and(ww + ox >= 0, ww + ox <= W - 1)
            rows.append(jnp.logical_and(rok, cok))
    masks = jnp.stack(rows).astype(jnp.float32)            # (9, LANES)

    # Channels-first, lane-dense layout: (CP, N*H*W) with zero-padded channel
    # rows so every kernel load/store is a full (8, 128k) tile.
    x_cf = jnp.transpose(x_nchw, (1, 0, 2, 3)).reshape(C1, N * HW)
    x_cf = jnp.pad(x_cf, ((0, CP - C1), (0, 0)))

    kernel = functools.partial(bottleneck_kernel, W=W, CP=CP, LANES=LANES)

    out_cf = pl.pallas_call(
        kernel,
        out_shape=jax.ShapeDtypeStruct((CP, N * HW), x_nchw.dtype),
        grid_spec=pltpu.PrefetchScalarGridSpec(
            num_scalar_prefetch=0,
            grid=(N // NB,),
            in_specs=[
                pl.BlockSpec((CP, LANES), lambda b: (0, b)),
                _const_spec(w1m.shape),
                _const_spec(b1p.shape),
                _const_spec(w2m.shape),
                _const_spec(b2p.shape),
                _const_spec(masks.shape),
            ],
            out_specs=pl.BlockSpec((CP, LANES), lambda b: (0, b)),
        ),
        compiler_params=pltpu.CompilerParams(
            dimension_semantics=("parallel",),
        ),
    )(x_cf, w1m, b1p, w2m, b2p, masks)

    out = out_cf[:C2].reshape(C2, N, H, W)
    return jnp.transpose(out, (1, 0, 2, 3))


def fold_bn(w_oihw, gamma, beta, mean, var, eps=1e-3):
    """Fold eval-mode BatchNorm into conv weight/bias. Returns HWIO weight."""
    scale = gamma / jnp.sqrt(var + eps)                 # (Cout,)
    w_folded = w_oihw * scale[:, None, None, None]      # (Cout, Cin, kH, kW)
    bias = beta - mean * scale
    w_hwio = jnp.transpose(w_folded, (2, 3, 1, 0))      # (kH, kW, Cin, Cout)
    return w_hwio, bias


def reference_jax(x_nchw, w1, b1, w2, b2):
    """Plain-JAX (f32) reference for the correctness check."""
    def conv_silu(x, w, b):
        y = jax.lax.conv_general_dilated(
            x, w, window_strides=(1, 1), padding="SAME",
            dimension_numbers=("NCHW", "HWIO", "NCHW"))
        y = y + b[None, :, None, None]
        return y * jax.nn.sigmoid(y)
    return x_nchw + conv_silu(conv_silu(x_nchw, w1, b1), w2, b2)


if __name__ == "__main__":
    key = jax.random.PRNGKey(0)
    N, C1, H, W = 2, 4, 16, 16          # matches Bottleneck(c1=4, c2=4)
    C2 = C1
    C_ = int(C2 * 0.5)                   # e = 0.5

    ks = jax.random.split(key, 16)
    x_nchw = jax.random.normal(ks[0], (N, C1, H, W), jnp.float32)

    # cv1 parameters (Conv2d(C1, C_, 3) + BN(C_))
    w1_oihw = 0.1 * jax.random.normal(ks[1], (C_, C1, 3, 3), jnp.float32)
    g1 = 1.0 + 0.1 * jax.random.normal(ks[2], (C_,), jnp.float32)
    be1 = 0.1 * jax.random.normal(ks[3], (C_,), jnp.float32)
    m1 = 0.1 * jax.random.normal(ks[4], (C_,), jnp.float32)
    v1 = jnp.abs(jax.random.normal(ks[5], (C_,), jnp.float32)) + 0.5

    # cv2 parameters (Conv2d(C_, C2, 3) + BN(C2))
    w2_oihw = 0.1 * jax.random.normal(ks[6], (C2, C_, 3, 3), jnp.float32)
    g2 = 1.0 + 0.1 * jax.random.normal(ks[7], (C2,), jnp.float32)
    be2 = 0.1 * jax.random.normal(ks[8], (C2,), jnp.float32)
    m2 = 0.1 * jax.random.normal(ks[9], (C2,), jnp.float32)
    v2 = jnp.abs(jax.random.normal(ks[10], (C2,), jnp.float32)) + 0.5

    w1, b1 = fold_bn(w1_oihw, g1, be1, m1, v1)
    w2, b2 = fold_bn(w2_oihw, g2, be2, m2, v2)

    out = bottleneck_pallas(x_nchw, w1, b1, w2, b2)
    out = jax.block_until_ready(out)

    ref = reference_jax(x_nchw, w1, b1, w2, b2)
    assert out.shape == (N, C2, H, W)
    # bf16 MXU operands vs the f32 reference -> ~1e-2-level deviation.
    assert jnp.allclose(out, ref, atol=5e-2, rtol=5e-2), "mismatch vs reference"

    print("KERNEL_OK")
</pallas_src>

<mosaic_0001>
module attributes {stable_mosaic.version = 11 : i64} {
  func.func @bottleneck_kernel(%arg0: i32, %arg1: memref<8x512xf32, #tpu.memory_space<vmem>>, %arg2: memref<8x72xbf16, #tpu.memory_space<vmem>>, %arg3: memref<8x1xf32, #tpu.memory_space<vmem>>, %arg4: memref<8x72xbf16, #tpu.memory_space<vmem>>, %arg5: memref<8x1xf32, #tpu.memory_space<vmem>>, %arg6: memref<9x512xf32, #tpu.memory_space<vmem>>, %arg7: memref<8x512xf32, #tpu.memory_space<vmem>>) attributes {dimension_semantics = [#tpu.dimension_semantics<parallel>], iteration_bounds = array<i64: 1>, scalar_prefetch = 0 : i64, scratch_operands = 0 : i64, tpu.core_type = #tpu.core_type<tc>, window_params = [{transform_indices = @transform_0, window_bounds = array<i64: 8, 512>}, {pipeline_mode = #tpu.pipeline_mode<synchronous>, transform_indices = @transform_1, window_bounds = array<i64: 8, 72>}, {pipeline_mode = #tpu.pipeline_mode<synchronous>, transform_indices = @transform_2, window_bounds = array<i64: 8, 1>}, {pipeline_mode = #tpu.pipeline_mode<synchronous>, transform_indices = @transform_3, window_bounds = array<i64: 8, 72>}, {pipeline_mode = #tpu.pipeline_mode<synchronous>, transform_indices = @transform_4, window_bounds = array<i64: 8, 1>}, {pipeline_mode = #tpu.pipeline_mode<synchronous>, transform_indices = @transform_5, window_bounds = array<i64: 9, 512>}, {transform_indices = @transform_6, window_bounds = array<i64: 8, 512>}]} {
    %c0 = arith.constant 0 : index
    %c0_0 = arith.constant 0 : index
    %0 = vector.load %arg1[%c0, %c0_0] : memref<8x512xf32, #tpu.memory_space<vmem>>, vector<8x512xf32>
    %c0_1 = arith.constant 0 : index
    %c0_2 = arith.constant 0 : index
    %1 = vector.load %arg6[%c0_1, %c0_2] : memref<9x512xf32, #tpu.memory_space<vmem>>, vector<9x512xf32>
    %c0_3 = arith.constant 0 : index
    %c0_4 = arith.constant 0 : index
    %2 = vector.load %arg2[%c0_3, %c0_4] : memref<8x72xbf16, #tpu.memory_space<vmem>>, vector<8x72xbf16>
    %c0_5 = arith.constant 0 : index
    %c0_6 = arith.constant 0 : index
    %3 = vector.load %arg3[%c0_5, %c0_6] : memref<8x1xf32, #tpu.memory_space<vmem>>, vector<8x1xf32>
    %c0_7 = arith.constant 0 : index
    %c0_8 = arith.constant 0 : index
    %4 = vector.load %arg4[%c0_7, %c0_8] : memref<8x72xbf16, #tpu.memory_space<vmem>>, vector<8x72xbf16>
    %c0_9 = arith.constant 0 : index
    %c0_10 = arith.constant 0 : index
    %5 = vector.load %arg5[%c0_9, %c0_10] : memref<8x1xf32, #tpu.memory_space<vmem>>, vector<8x1xf32>
    %c16_i32 = arith.constant 16 : i32
    %6 = tpu.dynamic_rotate %0 by %c16_i32 dim 1 : vector<8x512xf32>, i32 -> vector<8x512xf32>
    %c1_i32 = arith.constant 1 : i32
    %7 = tpu.dynamic_rotate %6 by %c1_i32 dim 1 : vector<8x512xf32>, i32 -> vector<8x512xf32>
    %8 = vector.extract_strided_slice %1 {offsets = [0, 0], sizes = [1, 512], strides = [1, 1]} : vector<9x512xf32> to vector<1x512xf32>
    %9 = vector.broadcast %8 : vector<1x512xf32> to vector<8x512xf32>
    %10 = arith.mulf %7, %9 : vector<8x512xf32>
    %11 = vector.extract_strided_slice %1 {offsets = [1, 0], sizes = [1, 512], strides = [1, 1]} : vector<9x512xf32> to vector<1x512xf32>
    %12 = vector.broadcast %11 : vector<1x512xf32> to vector<8x512xf32>
    %13 = arith.mulf %6, %12 : vector<8x512xf32>
    %c511_i32 = arith.constant 511 : i32
    %14 = tpu.dynamic_rotate %6 by %c511_i32 dim 1 : vector<8x512xf32>, i32 -> vector<8x512xf32>
    %15 = vector.extract_strided_slice %1 {offsets = [2, 0], sizes = [1, 512], strides = [1, 1]} : vector<9x512xf32> to vector<1x512xf32>
    %16 = vector.broadcast %15 : vector<1x512xf32> to vector<8x512xf32>
    %17 = arith.mulf %14, %16 : vector<8x512xf32>
    %c1_i32_11 = arith.constant 1 : i32
    %18 = tpu.dynamic_rotate %0 by %c1_i32_11 dim 1 : vector<8x512xf32>, i32 -> vector<8x512xf32>
    %19 = vector.extract_strided_slice %1 {offsets = [3, 0], sizes = [1, 512], strides = [1, 1]} : vector<9x512xf32> to vector<1x512xf32>
    %20 = vector.broadcast %19 : vector<1x512xf32> to vector<8x512xf32>
    %21 = arith.mulf %18, %20 : vector<8x512xf32>
    %c511_i32_12 = arith.constant 511 : i32
    %22 = tpu.dynamic_rotate %0 by %c511_i32_12 dim 1 : vector<8x512xf32>, i32 -> vector<8x512xf32>
    %23 = vector.extract_strided_slice %1 {offsets = [5, 0], sizes = [1, 512], strides = [1, 1]} : vector<9x512xf32> to vector<1x512xf32>
    %24 = vector.broadcast %23 : vector<1x512xf32> to vector<8x512xf32>
    %25 = arith.mulf %22, %24 : vector<8x512xf32>
    %c496_i32 = arith.constant 496 : i32
    %26 = tpu.dynamic_rotate %0 by %c496_i32 dim 1 : vector<8x512xf32>, i32 -> vector<8x512xf32>
    %c1_i32_13 = arith.constant 1 : i32
    %27 = tpu.dynamic_rotate %26 by %c1_i32_13 dim 1 : vector<8x512xf32>, i32 -> vector<8x512xf32>
    %28 = vector.extract_strided_slice %1 {offsets = [6, 0], sizes = [1, 512], strides = [1, 1]} : vector<9x512xf32> to vector<1x512xf32>
    %29 = vector.broadcast %28 : vector<1x512xf32> to vector<8x512xf32>
    %30 = arith.mulf %27, %29 : vector<8x512xf32>
    %31 = vector.extract_strided_slice %1 {offsets = [7, 0], sizes = [1, 512], strides = [1, 1]} : vector<9x512xf32> to vector<1x512xf32>
    %32 = vector.broadcast %31 : vector<1x512xf32> to vector<8x512xf32>
    %33 = arith.mulf %26, %32 : vector<8x512xf32>
    %c511_i32_14 = arith.constant 511 : i32
    %34 = tpu.dynamic_rotate %26 by %c511_i32_14 dim 1 : vector<8x512xf32>, i32 -> vector<8x512xf32>
    %35 = vector.extract_strided_slice %1 {offsets = [8, 0], sizes = [1, 512], strides = [1, 1]} : vector<9x512xf32> to vector<1x512xf32>
    %36 = vector.broadcast %35 : vector<1x512xf32> to vector<8x512xf32>
    %37 = arith.mulf %34, %36 : vector<8x512xf32>
    %38 = tpu.concatenate %10, %13, %17, %21, %0, %25, %30, %33, %37 in 0 : vector<8x512xf32>, vector<8x512xf32>, vector<8x512xf32>, vector<8x512xf32>, vector<8x512xf32>, vector<8x512xf32>, vector<8x512xf32>, vector<8x512xf32>, vector<8x512xf32> -> vector<72x512xf32>
    %39 = arith.truncf %38 : vector<72x512xf32> to vector<72x512xbf16>
    %cst = arith.constant dense<0.000000e+00> : vector<8x512xf32>
    %40 = tpu.matmul %2, %39, %cst {dimension_numbers = #tpu.dot_dimension_numbers<[1], [0], [0], [1], [0, 0, 1, 1], [], []>} : vector<8x72xbf16>, vector<72x512xbf16>, vector<8x512xf32> -> vector<8x512xf32>
    %41 = vector.broadcast %3 : vector<8x1xf32> to vector<8x512xf32>
    %42 = arith.addf %40, %41 : vector<8x512xf32>
    %cst_15 = arith.constant 0.000000e+00 : f32
    %43 = vector.broadcast %cst_15 : f32 to vector<8x512xf32>
    %44 = arith.subf %43, %42 : vector<8x512xf32>
    %45 = math.exp %44 : vector<8x512xf32>
    %cst_16 = arith.constant 1.000000e+00 : f32
    %46 = vector.broadcast %cst_16 : f32 to vector<8x512xf32>
    %47 = arith.addf %46, %45 : vector<8x512xf32>
    %48 = tpu.reciprocal %47 : vector<8x512xf32> -> vector<8x512xf32>
    %49 = arith.mulf %42, %48 : vector<8x512xf32>
    %c16_i32_17 = arith.constant 16 : i32
    %50 = tpu.dynamic_rotate %49 by %c16_i32_17 dim 1 : vector<8x512xf32>, i32 -> vector<8x512xf32>
    %c1_i32_18 = arith.constant 1 : i32
    %51 = tpu.dynamic_rotate %50 by %c1_i32_18 dim 1 : vector<8x512xf32>, i32 -> vector<8x512xf32>
    %52 = vector.extract_strided_slice %1 {offsets = [0, 0], sizes = [1, 512], strides = [1, 1]} : vector<9x512xf32> to vector<1x512xf32>
    %53 = vector.broadcast %52 : vector<1x512xf32> to vector<8x512xf32>
    %54 = arith.mulf %51, %53 : vector<8x512xf32>
    %55 = vector.extract_strided_slice %1 {offsets = [1, 0], sizes = [1, 512], strides = [1, 1]} : vector<9x512xf32> to vector<1x512xf32>
    %56 = vector.broadcast %55 : vector<1x512xf32> to vector<8x512xf32>
    %57 = arith.mulf %50, %56 : vector<8x512xf32>
    %c511_i32_19 = arith.constant 511 : i32
    %58 = tpu.dynamic_rotate %50 by %c511_i32_19 dim 1 : vector<8x512xf32>, i32 -> vector<8x512xf32>
    %59 = vector.extract_strided_slice %1 {offsets = [2, 0], sizes = [1, 512], strides = [1, 1]} : vector<9x512xf32> to vector<1x512xf32>
    %60 = vector.broadcast %59 : vector<1x512xf32> to vector<8x512xf32>
    %61 = arith.mulf %58, %60 : vector<8x512xf32>
    %c1_i32_20 = arith.constant 1 : i32
    %62 = tpu.dynamic_rotate %49 by %c1_i32_20 dim 1 : vector<8x512xf32>, i32 -> vector<8x512xf32>
    %63 = vector.extract_strided_slice %1 {offsets = [3, 0], sizes = [1, 512], strides = [1, 1]} : vector<9x512xf32> to vector<1x512xf32>
    %64 = vector.broadcast %63 : vector<1x512xf32> to vector<8x512xf32>
    %65 = arith.mulf %62, %64 : vector<8x512xf32>
    %c511_i32_21 = arith.constant 511 : i32
    %66 = tpu.dynamic_rotate %49 by %c511_i32_21 dim 1 : vector<8x512xf32>, i32 -> vector<8x512xf32>
    %67 = vector.extract_strided_slice %1 {offsets = [5, 0], sizes = [1, 512], strides = [1, 1]} : vector<9x512xf32> to vector<1x512xf32>
    %68 = vector.broadcast %67 : vector<1x512xf32> to vector<8x512xf32>
    %69 = arith.mulf %66, %68 : vector<8x512xf32>
    %c496_i32_22 = arith.constant 496 : i32
    %70 = tpu.dynamic_rotate %49 by %c496_i32_22 dim 1 : vector<8x512xf32>, i32 -> vector<8x512xf32>
    %c1_i32_23 = arith.constant 1 : i32
    %71 = tpu.dynamic_rotate %70 by %c1_i32_23 dim 1 : vector<8x512xf32>, i32 -> vector<8x512xf32>
    %72 = vector.extract_strided_slice %1 {offsets = [6, 0], sizes = [1, 512], strides = [1, 1]} : vector<9x512xf32> to vector<1x512xf32>
    %73 = vector.broadcast %72 : vector<1x512xf32> to vector<8x512xf32>
    %74 = arith.mulf %71, %73 : vector<8x512xf32>
    %75 = vector.extract_strided_slice %1 {offsets = [7, 0], sizes = [1, 512], strides = [1, 1]} : vector<9x512xf32> to vector<1x512xf32>
    %76 = vector.broadcast %75 : vector<1x512xf32> to vector<8x512xf32>
    %77 = arith.mulf %70, %76 : vector<8x512xf32>
    %c511_i32_24 = arith.constant 511 : i32
    %78 = tpu.dynamic_rotate %70 by %c511_i32_24 dim 1 : vector<8x512xf32>, i32 -> vector<8x512xf32>
    %79 = vector.extract_strided_slice %1 {offsets = [8, 0], sizes = [1, 512], strides = [1, 1]} : vector<9x512xf32> to vector<1x512xf32>
    %80 = vector.broadcast %79 : vector<1x512xf32> to vector<8x512xf32>
    %81 = arith.mulf %78, %80 : vector<8x512xf32>
    %82 = tpu.concatenate %54, %57, %61, %65, %49, %69, %74, %77, %81 in 0 : vector<8x512xf32>, vector<8x512xf32>, vector<8x512xf32>, vector<8x512xf32>, vector<8x512xf32>, vector<8x512xf32>, vector<8x512xf32>, vector<8x512xf32>, vector<8x512xf32> -> vector<72x512xf32>
    %83 = arith.truncf %82 : vector<72x512xf32> to vector<72x512xbf16>
    %cst_25 = arith.constant dense<0.000000e+00> : vector<8x512xf32>
    %84 = tpu.matmul %4, %83, %cst_25 {dimension_numbers = #tpu.dot_dimension_numbers<[1], [0], [0], [1], [0, 0, 1, 1], [], []>} : vector<8x72xbf16>, vector<72x512xbf16>, vector<8x512xf32> -> vector<8x512xf32>
    %85 = vector.broadcast %5 : vector<8x1xf32> to vector<8x512xf32>
    %86 = arith.addf %84, %85 : vector<8x512xf32>
    %cst_26 = arith.constant 0.000000e+00 : f32
    %87 = vector.broadcast %cst_26 : f32 to vector<8x512xf32>
    %88 = arith.subf %87, %86 : vector<8x512xf32>
    %89 = math.exp %88 : vector<8x512xf32>
    %cst_27 = arith.constant 1.000000e+00 : f32
    %90 = vector.broadcast %cst_27 : f32 to vector<8x512xf32>
    %91 = arith.addf %90, %89 : vector<8x512xf32>
    %92 = tpu.reciprocal %91 : vector<8x512xf32> -> vector<8x512xf32>
    %93 = arith.mulf %86, %92 : vector<8x512xf32>
    %94 = arith.addf %0, %93 : vector<8x512xf32>
    %c0_28 = arith.constant 0 : index
    %c0_29 = arith.constant 0 : index
    %95 = vector.load %arg7[%c0_28, %c0_29] : memref<8x512xf32, #tpu.memory_space<vmem>>, vector<8x512xf32>
    tpu.vector_store %arg7[%c0_28, %c0_29], %94 {strides = array<i32>} : memref<8x512xf32, #tpu.memory_space<vmem>>, vector<8x512xf32>,
    return
  }
  func.func @transform_0(%arg0: i32) -> (i32, i32) {
    %c0_i32 = arith.constant 0 : i32
    %c0_i32_0 = arith.constant 0 : i32
    return %c0_i32, %arg0 : i32, i32
  }
  func.func @transform_1(%arg0: i32) -> (i32, i32) {
    %c0_i32 = arith.constant 0 : i32
    %c0_i32_0 = arith.constant 0 : i32
    %c0_i32_1 = arith.constant 0 : i32
    return %c0_i32, %c0_i32_0 : i32, i32
  }
  func.func @transform_2(%arg0: i32) -> (i32, i32) {
    %c0_i32 = arith.constant 0 : i32
    %c0_i32_0 = arith.constant 0 : i32
    %c0_i32_1 = arith.constant 0 : i32
    return %c0_i32, %c0_i32_0 : i32, i32
  }
  func.func @transform_3(%arg0: i32) -> (i32, i32) {
    %c0_i32 = arith.constant 0 : i32
    %c0_i32_0 = arith.constant 0 : i32
    %c0_i32_1 = arith.constant 0 : i32
    return %c0_i32, %c0_i32_0 : i32, i32
  }
  func.func @transform_4(%arg0: i32) -> (i32, i32) {
    %c0_i32 = arith.constant 0 : i32
    %c0_i32_0 = arith.constant 0 : i32
    %c0_i32_1 = arith.constant 0 : i32
    return %c0_i32, %c0_i32_0 : i32, i32
  }
  func.func @transform_5(%arg0: i32) -> (i32, i32) {
    %c0_i32 = arith.constant 0 : i32
    %c0_i32_0 = arith.constant 0 : i32
    %c0_i32_1 = arith.constant 0 : i32
    return %c0_i32, %c0_i32_0 : i32, i32
  }
  func.func @transform_6(%arg0: i32) -> (i32, i32) {
    %c0_i32 = arith.constant 0 : i32
    %c0_i32_0 = arith.constant 0 : i32
    return %c0_i32, %arg0 : i32, i32
  }
}

</mosaic_0001>

<bundles_post_ra>
// kernel: tpu_custom_call.1
= control target key start
LH: loop header
LB: loop body
LE: loop exit
PB: predicated region body
PF: predicated region fallthrough
CT: control target
= control target key end

     0   :  { %11 = vsyncpa [#allocation3], 0  ;;  %s1530_s0 = inlined_call_operand.hbm [shape: f32[8,512], index: 0, kind: input, shape index: {}]   ;;  %s1531_s1 = inlined_call_operand.vmem [shape: bf16[8,72], index: 1, kind: input, shape index: {}]   ;;  %s1532_s2 = inlined_call_operand.vmem [shape: f32[8,1], index: 2, kind: input, shape index: {}]   ;;  %s1533_s3 = inlined_call_operand.vmem [shape: bf16[8,72], index: 3, kind: input, shape index: {}]   ;;  %s1534_s4 = inlined_call_operand.vmem [shape: f32[8,1], index: 4, kind: input, shape index: {}]   ;;  %s1535_s5 = inlined_call_operand.hbm [shape: f32[9,512], index: 5, kind: input, shape index: {}]   ;;  %s1536_s6 = inlined_call_operand.hbm [shape: f32[8,512], index: 6, kind: output, shape index: {}]  }
   0x1   :  { %12 = vsyncpa [#allocation6], 0 }
   0x2   :  { %13 = vsyncpa [#allocation4], 0  ;;  %s896_s21 = smov [#allocation2]   ;;  %s897_s23 = smov [#allocation5]  }
   0x3   :  { %s20_s22 = sshll.u32 %s896_s21, 4  ;;  %s37_s24 = sshll.u32 %s897_s23, 4  ;;  %s21_s22 = int_to_ptr.vmem [resolvable:$true] %s20_s22  ;;  %s38_s24 = int_to_ptr.vmem [resolvable:$true] %s37_s24 }
   0x4   :  { %s838_s25 = scalar_lea.vmem %s21_s22, 512  ;;  %p843_p1 = scmp.lt.s32.totalorder %s21_s22, %s21_s22 }
   0x5   :  { %p839_p0 = scmp.ne.s32.totalorder %s21_s22, %s838_s25  ;;  %p844_p2 = scmp.lt.s32.totalorder %s838_s25, %s838_s25 }
   0x7   :  { %p845_p3 = por %p844_p2, %p843_p1 }
   0x9   :  { %p846_p4 = pnand %p845_p3, %p839_p0 }
   0xb   :  { %849 = shalt.err (!%p846_p4)
}
   0xc   :  { %23 = dma.hbm_to_vmem [thread:$0]  %s1530_s0, 512, %s21_s22, [#allocation3]  }
   0xd   :  { %s858_s28 = scalar_lea.vmem %s38_s24, 1024  ;;  %p863_p6 = scmp.lt.s32.totalorder %s38_s24, %s38_s24 }
   0xe   :  { %p859_p5 = scmp.ne.s32.totalorder %s38_s24, %s858_s28  ;;  %p864_p7 = scmp.lt.s32.totalorder %s858_s28, %s858_s28 }
  0x10   :  { %p865_p8 = por %p864_p7, %p863_p6 }
  0x12   :  { %p866_p9 = pnand %p865_p8, %p859_p5 }
  0x14   :  { %869 = shalt.err (!%p866_p9)
}
  0x15   :  { %s898_s29 = smov 512   ;;  %s899_s30 = smov 32  }
  0x16   :  { %43 = dma.hbm_to_vmem [thread:$0]  %s1535_s5, 1024, %s38_s24, [#allocation6], %s898_s29, %s898_s29, %s899_s30  }
  0x17   :  { %890 = dma.done.wait [#allocation3], 512  }
  0x18   :  { %891 = vsyncadd [#allocation3], 4294966784 }
  0x19   :  { %892 = dma.done.wait [#allocation6], 1024  }
  0x1a   :  { %893 = vsyncadd [#allocation6], 4294966272  ;;  %v947_v0 = vld [vmem:[#allocation2 + $0x10] sm:$0xff]  ;;  %v949_v1 = vld [vmem:[#allocation2] sm:$0xff]  ;;  %s900_s0 = smov 112   ;;  %s901_s5 = smov 16   ;;  %v75_v4 = vlaneseq }
  0x1b   :  { %1546 = vst [vmem:[#allocation11_spill] sm:$0xff] %v947_v0  ;;  %1547 = vst [vmem:[#allocation12_spill] sm:$0xff] %v949_v1  ;;  %236 = vrot.lane.b32.xlu1 %v947_v0, %s900_s0  ;;  %232 = vrot.lane.b32.xlu0 %v949_v1, %s900_s0  ;;  %v955_v2 = vld [vmem:[#allocation2 + $0x18] sm:$0xff]  ;;  %v957_v3 = vld [vmem:[#allocation2 + $0x8] sm:$0xff]  ;;  %s902_s9 = smov 127   ;;  %s903_s10 = smov 1  }
  0x1c   :  { %1548 = vst [vmem:[#allocation13_spill] sm:$0xff] %v955_v2  ;;  %1549 = vst [vmem:[#allocation14_spill] sm:$0xff] %v957_v3  ;;  %v987_v5 = vand.u32 127, %v75_v4  ;;  %v904_v22 = vmov 0   ;;  %v64_v23 = vld [vmem:[%s1532_s2] sm:$0xff]  ;;  %v1073_v30 = vshrl.u32 %v75_v4, 7 }
  0x1d   :  { %403 = vmatprep.mubr.bf16.mxu0 %v904_v22  ;;  %444 = vmatprep.mubr.bf16.mxu1 %v904_v22  ;;  %v1080_v34 = vld [vmem:[#allocation5] sm:$0xff]  ;;  %v1082_v35 = vld [vmem:[#allocation5 + $0x8] sm:$0xff]  ;;  %v1091_v39 = vld [vmem:[#allocation5 + $0x10] sm:$0xff]  ;;  %vm358_vm4 = vcmask 1043456   ;;  %vm354_vm5 = vcmask 588800  }
  0x1e   :  { %vm240_vm0 = vcmp.lt.s32.totalorder %v987_v5, 112  ;;  %vm77_vm1 = vcmp.lt.s32.totalorder %v987_v5, 16  ;;  %797 = vset.pattern.permute.xlu0 %v904_v22  ;;  %v279_v33 = vsub.s32 7, %v1073_v30  ;;  %v1085_v36 = vsub.s32 1, %v1073_v30  ;;  %v1088_v38 = vld [vmem:[#allocation5 + $0x20] ss:$0 sm:$0xff] }
  0x1f   :  { %238 = vrot.lane.b32.xlu1 %v955_v2, %s900_s0  ;;  %234 = vrot.lane.b32.xlu0 %v957_v3, %s900_s0  ;;  %v214_v37 = vsub.s32 5, %v1073_v30  ;;  %vm143_vm2 = vcmp.lt.s32.totalorder %v987_v5, 127  ;;  %v1093_v40 = vld [vmem:[#allocation5 + $0x18] sm:$0xff]  ;;  %v182_v41 = vsub.s32 3, %v1073_v30  ;;  %v259_v45 = vsub.s32 6, %v1073_v30 }
  0x20   :  { %vm90_vm3 = vcmp.lt.s32.totalorder %v987_v5, 1  ;;  %v1101_v46 = vrot.slane %v1080_v34, %v279_v33  ;;  %v1104_v47 = vrot.slane %v1082_v35, %v279_v33  ;;  %v1108_v49 = vrot.slane %v1091_v39, %v279_v33  ;;  %v1120_v53 = vld [vmem:[#allocation5 + $0x30] ss:$0 sm:$0xff]  ;;  %v1122_v54 = vld [vmem:[#allocation5 + $0x28] ss:$0 sm:$0xff] }
  0x21   :  { %v1111_v50 = vrot.slane %v1093_v40, %v279_v33  ;;  %v1115_v51 = vrot.slane %v1082_v35, %v1085_v36  ;;  %v1118_v52 = vrot.slane %v1080_v34, %v214_v37  ;;  %v1124_v55 = vld [vmem:[#allocation5 + $0x38] ss:$0 sm:$0xff]  ;;  %v1127_v56 = vrot.slane %v1082_v35, %v214_v37  ;;  %v65_v5 = vld [vmem:[%s1533_s3] sm:$0xf]  ;;  %s905_s3 = smov [#allocation7]  }
  0x22   :  { %v1130_v57 = vrot.slane %v1091_v39, %v214_v37  ;;  %v1133_v58 = vrot.slane %v1093_v40, %v214_v37  ;;  %v1136_v59 = vrot.slane %v1082_v35, %v182_v41  ;;  %s765_s16 = sshll.u32 %s905_s3, 4  ;;  %s766_s16 = int_to_ptr.vmem [resolvable:$true] %s765_s16 }
  0x23   :  { %67 = vrot.lane.b32.xlu0 %v949_v1, %s901_s5  ;;  %69 = vrot.lane.b32.xlu1 %v957_v3, %s901_s5  ;;  %s870_s17 = scalar_lea.vmem %s766_s16, 512  ;;  %p875_p11 = scmp.lt.s32.totalorder %s766_s16, %s766_s16 }
  0x24   :  { %p871_p10 = scmp.ne.s32.totalorder %s766_s16, %s870_s17  ;;  %p876_p12 = scmp.lt.s32.totalorder %s870_s17, %s870_s17 }
  0x26   :  { %p877_p13 = por %p876_p12, %p875_p11 }
  0x27   :  { %71 = vrot.lane.b32.xlu0 %v947_v0, %s901_s5  ;;  %73 = vrot.lane.b32.xlu1 %v955_v2, %s901_s5 }
  0x28   :  { %p878_p0 = pnand %p877_p13, %p871_p10 }
  0x2b   :  { %200 = vrot.lane.b32.xlu0 %v949_v1, %s902_s9  ;;  %202 = vrot.lane.b32.xlu1 %v957_v3, %s902_s9 }
  0x2f   :  { %204 = vrot.lane.b32.xlu0 %v947_v0, %s902_s9  ;;  %206 = vrot.lane.b32.xlu1 %v955_v2, %s902_s9 }
  0x33   :  { %168 = vrot.lane.b32.xlu0 %v949_v1, %s903_s10  ;;  %170 = vrot.lane.b32.xlu1 %v957_v3, %s903_s10 }
  0x37   :  { %172 = vrot.lane.b32.xlu0 %v947_v0, %s903_s10  ;;  %174 = vrot.lane.b32.xlu1 %v955_v2, %s903_s10 }
  0x8d   :  { %v237_v6 = vpop.permute.xlu1 %236  ;;  %v233_v7 = vpop.permute.xlu0 %232 }
  0x91   :  { %v235_v8 = vpop.permute.xlu0 %234  ;;  %v239_v11 = vpop.permute.xlu1 %238 }
  0x92   :  { %v992_v9 = vsel %vm240_vm0, %v233_v7, %v235_v8  ;;  %v996_v10 = vsel %vm240_vm0, %v235_v8, %v237_v6  ;;  %v1004_v12 = vsel %vm240_vm0, %v237_v6, %v239_v11  ;;  %v1008_v13 = vsel %vm240_vm0, %v239_v11, %v233_v7 }
  0x93   :  { %297 = vrot.lane.b32.xlu0 %v992_v9, %s902_s9  ;;  %299 = vrot.lane.b32.xlu1 %v996_v10, %s902_s9  ;;  %v1145_v6 = vrot.slane %v1082_v35, %v259_v45 }
  0x95   :  { %v70_v14 = vpop.permute.xlu1 %69  ;;  %v68_v15 = vpop.permute.xlu0 %67 }
  0x96   :  { %v1029_v18 = vsel %vm77_vm1, %v68_v15, %v70_v14 }
  0x97   :  { %301 = vrot.lane.b32.xlu0 %v1004_v12, %s902_s9  ;;  %303 = vrot.lane.b32.xlu1 %v1008_v13, %s902_s9 }
  0x99   :  { %v74_v16 = vpop.permute.xlu1 %73  ;;  %v72_v19 = vpop.permute.xlu0 %71 }
  0x9a   :  { %v1025_v17 = vsel %vm77_vm1, %v74_v16, %v68_v15  ;;  %v1037_v20 = vsel %vm77_vm1, %v72_v19, %v74_v16  ;;  %v1041_v21 = vsel %vm77_vm1, %v70_v14, %v72_v19  ;;  %v1151_v15 = vrot.slane %v1091_v39, %v182_v41 }
  0x9b   :  { %245 = vrot.lane.b32.xlu0 %v992_v9, %s903_s10  ;;  %247 = vrot.lane.b32.xlu1 %v996_v10, %s903_s10  ;;  %v1154_v16 = vrot.slane %v1080_v34, %v182_v41  ;;  %v1157_v19 = vrot.slane %v1093_v40, %v182_v41  ;;  %v1170_v41 = vrot.slane %v1093_v40, %v259_v45 }
  0x9d   :  { %v1061_v24 = vpop.permute.xlu1 %202  ;;  %v1063_v25 = vpop.permute.xlu0 %200 }
  0x9f   :  { %249 = vrot.lane.b32.xlu0 %v1004_v12, %s903_s10  ;;  %251 = vrot.lane.b32.xlu1 %v1008_v13, %s903_s10 }
  0xa1   :  { %v1065_v26 = vpop.permute.xlu1 %206  ;;  %v1067_v27 = vpop.permute.xlu0 %204 }
  0xa3   :  { %135 = vrot.lane.b32.xlu0 %v1025_v17, %s902_s9  ;;  %137 = vrot.lane.b32.xlu1 %v1029_v18, %s902_s9 }
  0xa5   :  { %v1069_v28 = vpop.permute.xlu1 %170  ;;  %v1071_v29 = vpop.permute.xlu0 %168 }
  0xa7   :  { %139 = vrot.lane.b32.xlu0 %v1041_v21, %s902_s9  ;;  %141 = vrot.lane.b32.xlu1 %v1037_v20, %s902_s9 }
  0xa9   :  { %v1075_v31 = vpop.permute.xlu1 %174  ;;  %v1077_v32 = vpop.permute.xlu0 %172 }
  0xab   :  { %82 = vrot.lane.b32.xlu0 %v1025_v17, %s903_s10  ;;  %84 = vrot.lane.b32.xlu1 %v1029_v18, %s903_s10 }
  0xaf   :  { %86 = vrot.lane.b32.xlu0 %v1041_v21, %s903_s10  ;;  %88 = vrot.lane.b32.xlu1 %v1037_v20, %s903_s10 }
  0xb3   :  { %351 = vperm.xlu0 %797, %v64_v23  }
 0x105   :  { %v300_v42 = vpop.permute.xlu1 %299  ;;  %v298_v43 = vpop.permute.xlu0 %297 }
 0x106   :  { %v307_v44 = vsel %vm143_vm2, %v298_v43, %v300_v42 }
 0x107   :  { %v325_v48 = vmul.f32 %v1088_v38, %v307_v44  ;;  %v1160_v44 = vrot.slane %v1080_v34, %v259_v45 }
 0x109   :  { %v304_v60 = vpop.permute.xlu1 %303  ;;  %v302_v61 = vpop.permute.xlu0 %301  ;;  %v345_v14 = vpack.c.bf16 %v325_v48, %v325_v48  ;;  %v294_v48 = vmul.f32 %v1104_v47, %v996_v10 }
 0x10a   :  { %v308_v62 = vsel %vm143_vm2, %v304_v60, %v298_v43  ;;  %v305_v63 = vsel %vm143_vm2, %v302_v61, %v304_v60  ;;  %v306_v4 = vsel %vm143_vm2, %v300_v42, %v302_v61  ;;  %v1167_v61 = vrot.slane %v1091_v39, %v259_v45 }
 0x10b   :  { %v327_v7 = vmul.f32 %v1120_v53, %v305_v63  ;;  %v326_v8 = vmul.f32 %v1122_v54, %v306_v4  ;;  %v328_v11 = vmul.f32 %v1124_v55, %v308_v62  ;;  %v209_v62 = vsel %vm143_vm2, %v1061_v24, %v1067_v27 }
 0x10c   :  { %v360_v10 = vsel %vm358_vm4, %v345_v14, 0  ;;  %v295_v45 = vmul.f32 %v1108_v49, %v1004_v12  ;;  %v296_v14 = vmul.f32 %v1111_v50, %v1008_v13  ;;  %v208_v12 = vsel %vm143_vm2, %v1067_v27, %v1065_v26 }
 0x10d   :  { %v248_v23 = vpop.permute.xlu1 %247  ;;  %v246_v33 = vpop.permute.xlu0 %245  ;;  %v346_v37 = vpack.c.bf16 %v326_v8, %v326_v8  ;;  %v348_v42 = vpack.c.bf16 %v328_v11, %v328_v11  ;;  %v347_v43 = vpack.c.bf16 %v327_v7, %v327_v7  ;;  %v293_v7 = vmul.f32 %v1101_v46, %v992_v9 }
 0x10e   :  { %v255_v60 = vsel %vm90_vm3, %v246_v33, %v248_v23  ;;  %v211_v8 = vsel %vm143_vm2, %v1065_v26, %v1063_v25  ;;  %v150_v11 = vsub.s32 2, %v1073_v30  ;;  %v210_v9 = vsel %vm143_vm2, %v1063_v25, %v1061_v24 }
 0x10f   :  { %v274_v63 = vmul.f32 %v1145_v6, %v255_v60  ;;  %779 = vmatprep.subr.msk.bf16.mxu0 %vm358_vm4, %v346_v37  ;;  %781 = vmatprep.subr.msk.bf16.mxu1 %vm358_vm4, %v348_v42  ;;  %v366_v4 = vsel %vm358_vm4, %v347_v43, 0  ;;  %v229_v60 = vmul.f32 %v1127_v56, %v209_v62  ;;  %v231_v24 = vmul.f32 %v1133_v58, %v211_v8 }
 0x110   :  { %378 = vmatpush1.bf16.msra.mxu0 %v360_v10  ;;  %419 = vmatpush1.bf16.msra.mxu1 %v366_v4  ;;  %v1213_v62 = vrot.slane %v1080_v34, %v150_v11 }
 0x111   :  { %v252_v37 = vpop.permute.xlu1 %251  ;;  %v250_v42 = vpop.permute.xlu0 %249  ;;  %v342_v43 = vpack.c.bf16 %v294_v48, %v274_v63  ;;  %v228_v48 = vmul.f32 %v1118_v52, %v210_v9  ;;  %v97_v63 = vsub.s32 0, %v1073_v30  ;;  %v178_v9 = vsel %vm90_vm3, %v1071_v29, %v1069_v28 }
 0x112   :  { %v256_v10 = vsel %vm90_vm3, %v252_v37, %v246_v33  ;;  %v253_v13 = vsel %vm90_vm3, %v250_v42, %v252_v37  ;;  %v254_v4 = vsel %vm90_vm3, %v248_v23, %v250_v42  ;;  %v1216_v33 = vrot.slane %v1093_v40, %v150_v11 }
 0x113   :  { %v273_v25 = vmul.f32 %v1160_v44, %v256_v10  ;;  %v275_v26 = vmul.f32 %v1167_v61, %v254_v4  ;;  %v276_v27 = vmul.f32 %v1170_v41, %v253_v13  ;;  %379 = vmatprep.subr.bf16.mxu0 %v342_v43  ;;  %v230_v23 = vmul.f32 %v1130_v57, %v208_v12 }
 0x114   :  { %v177_v43 = vsel %vm90_vm3, %v1069_v28, %v1077_v32  ;;  %v338_v13 = vpack.c.bf16 %v229_v60, %v957_v3  ;;  %v1230_v30 = vrot.slane %v1082_v35, %v150_v11  ;;  %v176_v28 = vsel %vm90_vm3, %v1077_v32, %v1075_v31 }
 0x115   :  { %v138_v8 = vpop.permute.xlu1 %137  ;;  %v136_v37 = vpop.permute.xlu0 %135  ;;  %v341_v42 = vpack.c.bf16 %v293_v7, %v273_v25  ;;  %v344_v10 = vpack.c.bf16 %v296_v14, %v276_v27  ;;  %v343_v4 = vpack.c.bf16 %v295_v45, %v275_v26  ;;  %v340_v45 = vpack.c.bf16 %v231_v24, %v955_v2 }
 0x116   :  { %v146_v7 = vsel %vm143_vm2, %v136_v37, %v138_v8  ;;  %v1236_v14 = vrot.slane %v1091_v39, %v150_v11  ;;  %v337_v12 = vpack.c.bf16 %v228_v48, %v949_v1  ;;  %v1244_v60 = vrot.slane %v1082_v35, %v97_v63 }
 0x117   :  { %380 = vmatpush1.bf16.msra.mxu0 %v341_v42  ;;  %420 = vmatprep.subr.bf16.mxu1 %v344_v10  ;;  %v197_v25 = vmul.f32 %v1136_v59, %v178_v9  ;;  %v198_v26 = vmul.f32 %v1151_v15, %v177_v43  ;;  %v179_v11 = vsel %vm90_vm3, %v1075_v31, %v1071_v29 }
 0x118   :  { %381 = vmatprep.subr.bf16.mxu0 %v338_v13  ;;  %421 = vmatpush1.bf16.msra.mxu1 %v343_v4  ;;  %v339_v32 = vpack.c.bf16 %v230_v23, %v947_v0  ;;  %v164_v42 = vmul.f32 %v1213_v62, %v146_v7  ;;  %v199_v4 = vmul.f32 %v1157_v19, %v176_v28 }
 0x119   :  { %v142_v24 = vpop.permute.xlu1 %141  ;;  %422 = vmatprep.subr.bf16.mxu1 %v340_v45  ;;  %v140_v27 = vpop.permute.xlu0 %139  ;;  %v1266_v23 = vrot.slane %v1080_v34, %v1085_v36  ;;  %v196_v43 = vmul.f32 %v1154_v16, %v179_v11 }
 0x11a   :  { %v147_v35 = vsel %vm143_vm2, %v142_v24, %v136_v37  ;;  %v144_v48 = vsel %vm143_vm2, %v140_v27, %v142_v24  ;;  %v145_v10 = vsel %vm143_vm2, %v138_v8, %v140_v27  ;;  %v1270_v37 = vrot.slane %v1091_v39, %v1085_v36 }
 0x11b   :  { %v167_v29 = vmul.f32 %v1216_v33, %v147_v35  ;;  %v165_v31 = vmul.f32 %v1230_v30, %v145_v10  ;;  %v166_v9 = vmul.f32 %v1236_v14, %v144_v48  ;;  %382 = vmatpush1.bf16.msra.mxu0 %v337_v12  ;;  %v1275_v8 = vrot.slane %v1093_v40, %v1085_v36 }
 0x11c   :  { %423 = vmatpush1.bf16.msra.mxu1 %v339_v32  ;;  %v132_v24 = vmul.f32 %v1115_v51, %v1029_v18  ;;  %v333_v35 = vpack.c.bf16 %v196_v43, %v164_v42  ;;  %v1282_v48 = vrot.slane %v1080_v34, %v97_v63  ;;  %v1286_v36 = vrot.slane %v1091_v39, %v97_v63  ;;  %v63_v43 = vld [vmem:[%s1531_s1] sm:$0xf] }
 0x11d   :  { %1550 = vst [vmem:[#allocation15_spill] sm:$0xff] %v1275_v8  ;;  %v85_v13 = vpop.permute.xlu1 %84  ;;  %v83_v7 = vpop.permute.xlu0 %82  ;;  %v334_v45 = vpack.c.bf16 %v197_v25, %v165_v31  ;;  %v336_v28 = vpack.c.bf16 %v199_v4, %v167_v29  ;;  %v335_v12 = vpack.c.bf16 %v198_v26, %v166_v9  ;;  %v1289_v25 = vrot.slane %v1093_v40, %v97_v63 }
 0x11e   :  { %v93_v27 = vsel %vm90_vm3, %v83_v7, %v85_v13  ;;  %1551 = vst [vmem:[#allocation16_spill] sm:$0xff] %v1282_v48  ;;  %1552 = vst [vmem:[#allocation17_spill] sm:$0xff] %v1286_v36  ;;  %v131_v18 = vmul.f32 %v1266_v23, %v1025_v17  ;;  %v133_v34 = vmul.f32 %v1270_v37, %v1041_v21 }
 0x11f   :  { %v112_v11 = vmul.f32 %v1244_v60, %v93_v27  ;;  %383 = vmatprep.subr.bf16.mxu0 %v334_v45  ;;  %424 = vmatprep.subr.bf16.mxu1 %v336_v28  ;;  %1553 = vst [vmem:[#allocation18_spill] sm:$0xff] %v1289_v25  ;;  %v134_v63 = vmul.f32 %v1275_v8, %v1037_v20 }
 0x120   :  { %384 = vmatpush1.bf16.msra.mxu0 %v333_v35  ;;  %425 = vmatpush1.bf16.msra.mxu1 %v335_v12 }
 0x121   :  { %v89_v26 = vpop.permute.xlu1 %88  ;;  %v87_v32 = vpop.permute.xlu0 %86  ;;  %v330_v42 = vpack.c.bf16 %v132_v24, %v112_v11 }
 0x122   :  { %v94_v10 = vsel %vm90_vm3, %v89_v26, %v83_v7  ;;  %v91_v39 = vsel %vm90_vm3, %v87_v32, %v89_v26  ;;  %v92_v40 = vsel %vm90_vm3, %v85_v13, %v87_v32 }
 0x123   :  { %v111_v17 = vmul.f32 %v1282_v48, %v94_v10  ;;  %v113_v4 = vmul.f32 %v1286_v36, %v92_v40  ;;  %v114_v29 = vmul.f32 %v1289_v25, %v91_v39  ;;  %385 = vmatprep.subr.bf16.mxu0 %v330_v42 }
 0x125   :  { %v329_v21 = vpack.c.bf16 %v131_v18, %v111_v17  ;;  %v332_v31 = vpack.c.bf16 %v134_v63, %v114_v29  ;;  %v331_v9 = vpack.c.bf16 %v133_v34, %v113_v4 }
 0x127   :  { %386 = vmatpush1.bf16.msra.mxu0 %v329_v21  ;;  %426 = vmatprep.subr.bf16.mxu1 %v332_v31 }
 0x128   :  { %427 = vmatpush1.bf16.msra.mxu1 %v331_v9 }
 0x12a   :  { %780 = vmatmul.mubr.msk.bf16.vlgmr.msra.gmra.mxu0 %vm354_vm5, %v63_v43 }
 0x12b   :  { %782 = vmatmul.mubr.msk.bf16.vlgmr.msra.gmra.mxu1 %vm354_vm5, %v63_v43  ;;  %677 = vmatprep.mubr.bf16.mxu0 %v904_v22 }
 0x12c   :  { %718 = vmatprep.mubr.bf16.mxu1 %v904_v22 }
 0x12e   :  { %v352_v20 = vpop.permute.xlu0 %351 }
 0x1ea   :  { %v405_v13 = vpop.f32.mrf.mxu0 }
 0x1eb   :  { %v406_v7 = vadd.f32 %v405_v13, %v352_v20  ;;  %v446_v45 = vpop.f32.mrf.mxu1 }
 0x1ec   :  { %v447_v28 = vadd.f32 %v446_v45, %v352_v20  ;;  %v407_v12 = vpop.f32.mrf.mxu0 }
 0x1ed   :  { %v453_v24 = vsub.f32 0.0, %v406_v7  ;;  %v408_v27 = vadd.f32 %v407_v12, %v352_v20  ;;  %v448_v35 = vpop.f32.mrf.mxu1 }
 0x1ee   :  { %v455_v11 = vsub.f32 0.0, %v447_v28  ;;  %v449_v18 = vadd.f32 %v448_v35, %v352_v20  ;;  %v409_v26 = vpop.f32.mrf.mxu0 }
 0x1ef   :  { %v457_v32 = vmul.f32 1.442695, %v453_v24  ;;  %v454_v42 = vsub.f32 0.0, %v408_v27  ;;  %v450_v34 = vpop.f32.mrf.mxu1 }
 0x1f0   :  { %v461_v10 = vmul.f32 1.442695, %v455_v11  ;;  %v456_v39 = vsub.f32 0.0, %v449_v18  ;;  %v410_v40 = vpop.f32.mrf.mxu0 }
 0x1f1   :  { %798 = vpow2.f32 %v457_v32  ;;  %v459_v22 = vmul.f32 1.442695, %v454_v42  ;;  %v451_v63 = vpop.f32.mrf.mxu1 }
 0x1f2   :  { %800 = vpow2.f32 %v461_v10  ;;  %v463_v17 = vmul.f32 1.442695, %v456_v39 }
 0x1f3   :  { %802 = vpow2.f32 %v459_v22 }
 0x1f4   :  { %804 = vpow2.f32 %v463_v17 }
 0x1fe   :  { %v799_v4 = vpop.eup %798 }
 0x1ff   :  { %v801_v29 = vpop.eup %800  ;;  %v465_v21 = vadd.f32 1.0, %v799_v4 }
 0x200   :  { %v803_v31 = vpop.eup %802  ;;  %v467_v9 = vadd.f32 1.0, %v801_v29 }
 0x201   :  { %v805_v43 = vpop.eup %804  ;;  %806 = vrcp.f32 %v465_v21  ;;  %v466_v20 = vadd.f32 1.0, %v803_v31 }
 0x202   :  { %808 = vrcp.f32 %v467_v9  ;;  %v468_v13 = vadd.f32 1.0, %v805_v43  ;;  %v66_v43 = vld [vmem:[%s1534_s4] sm:$0xff] }
 0x203   :  { %810 = vrcp.f32 %v466_v20 }
 0x204   :  { %812 = vrcp.f32 %v468_v13 }
 0x20e   :  { %v807_v45 = vpop.eup %806 }
 0x20f   :  { %v809_v12 = vpop.eup %808  ;;  %v1313_v24 = vmul.f32 %v807_v45, %v406_v7 }
 0x210   :  { %v811_v35 = vpop.eup %810  ;;  %v1315_v11 = vmul.f32 %v809_v12, %v447_v28 }
 0x211   :  { %557 = vrot.lane.b32.xlu1 %v1313_v24, %s900_s0  ;;  %v1321_v26 = vmul.f32 %v811_v35, %v408_v27  ;;  %v813_v32 = vpop.eup %812 }
 0x212   :  { %561 = vrot.lane.b32.xlu0 %v1315_v11, %s900_s0  ;;  %v1327_v7 = vmul.f32 %v813_v32, %v449_v18 }
 0x215   :  { %559 = vrot.lane.b32.xlu1 %v1321_v26, %s900_s0 }
 0x216   :  { %477 = vrot.lane.b32.xlu0 %v1313_v24, %s901_s5 }
 0x219   :  { %563 = vrot.lane.b32.xlu1 %v1327_v7, %s900_s0 }
 0x21a   :  { %481 = vrot.lane.b32.xlu0 %v1315_v11, %s901_s5 }
 0x21d   :  { %479 = vrot.lane.b32.xlu1 %v1321_v26, %s901_s5 }
 0x21e   :  { %541 = vrot.lane.b32.xlu0 %v1313_v24, %s902_s9 }
 0x221   :  { %483 = vrot.lane.b32.xlu1 %v1327_v7, %s901_s5 }
 0x222   :  { %545 = vrot.lane.b32.xlu0 %v1315_v11, %s902_s9 }
 0x225   :  { %543 = vrot.lane.b32.xlu1 %v1321_v26, %s902_s9 }
 0x226   :  { %525 = vrot.lane.b32.xlu0 %v1313_v24, %s903_s10 }
 0x229   :  { %547 = vrot.lane.b32.xlu1 %v1327_v7, %s902_s9 }
 0x22a   :  { %529 = vrot.lane.b32.xlu0 %v1315_v11, %s903_s10 }
 0x22d   :  { %527 = vrot.lane.b32.xlu1 %v1321_v26, %s903_s10 }
 0x231   :  { %531 = vrot.lane.b32.xlu1 %v1327_v7, %s903_s10 }
 0x283   :  { %v558_v28 = vpop.permute.xlu1 %557 }
 0x284   :  { %v562_v27 = vpop.permute.xlu0 %561 }
 0x287   :  { %v560_v18 = vpop.permute.xlu1 %559 }
 0x288   :  { %v1355_v42 = vsel %vm240_vm0, %v558_v28, %v560_v18  ;;  %v566_v34 = vsel %vm240_vm0, %v560_v18, %v562_v27  ;;  %v478_v63 = vpop.permute.xlu0 %477 }
 0x289   :  { %589 = vrot.lane.b32.xlu0 %v1355_v42, %s902_s9  ;;  %591 = vrot.lane.b32.xlu1 %v566_v34, %s902_s9 }
 0x28b   :  { %v564_v10 = vpop.permute.xlu1 %563 }
 0x28c   :  { %v568_v39 = vsel %vm240_vm0, %v564_v10, %v558_v28  ;;  %v1366_v40 = vsel %vm240_vm0, %v562_v27, %v564_v10  ;;  %v482_v21 = vpop.permute.xlu0 %481 }
 0x28d   :  { %595 = vrot.lane.b32.xlu1 %v568_v39, %s902_s9  ;;  %593 = vrot.lane.b32.xlu0 %v1366_v40, %s902_s9 }
 0x28f   :  { %v480_v22 = vpop.permute.xlu1 %479 }
 0x290   :  { %v1379_v4 = vsel %vm77_vm1, %v478_v63, %v480_v22  ;;  %v1391_v31 = vsel %vm77_vm1, %v480_v22, %v482_v21  ;;  %v542_v20 = vpop.permute.xlu0 %541 }
 0x291   :  { %571 = vrot.lane.b32.xlu1 %v566_v34, %s903_s10  ;;  %569 = vrot.lane.b32.xlu0 %v1355_v42, %s903_s10 }
 0x293   :  { %v484_v17 = vpop.permute.xlu1 %483 }
 0x294   :  { %v1383_v29 = vsel %vm77_vm1, %v484_v17, %v478_v63  ;;  %v1395_v9 = vsel %vm77_vm1, %v482_v21, %v484_v17  ;;  %v546_v45 = vpop.permute.xlu0 %545 }
 0x295   :  { %575 = vrot.lane.b32.xlu1 %v568_v39, %s903_s10  ;;  %573 = vrot.lane.b32.xlu0 %v1366_v40, %s903_s10  ;;  %1554 = vst [vmem:[#allocation19_spill] sm:$0xff] %v1395_v9 }
 0x297   :  { %v544_v13 = vpop.permute.xlu1 %543 }
 0x298   :  { %v1412_v35 = vpop.permute.xlu0 %525 }
 0x299   :  { %511 = vrot.lane.b32.xlu1 %v1379_v4, %s902_s9  ;;  %509 = vrot.lane.b32.xlu0 %v1383_v29, %s902_s9 }
 0x29b   :  { %v548_v12 = vpop.permute.xlu1 %547 }
 0x29c   :  { %v1414_v28 = vpop.permute.xlu0 %529 }
 0x29d   :  { %513 = vrot.lane.b32.xlu0 %v1391_v31, %s902_s9  ;;  %515 = vrot.lane.b32.xlu1 %v1395_v9, %s902_s9 }
 0x29f   :  { %v528_v32 = vpop.permute.xlu1 %527 }
 0x2a1   :  { %489 = vrot.lane.b32.xlu0 %v1383_v29, %s903_s10  ;;  %491 = vrot.lane.b32.xlu1 %v1379_v4, %s903_s10 }
 0x2a3   :  { %v1416_v27 = vpop.permute.xlu1 %531 }
 0x2a5   :  { %493 = vrot.lane.b32.xlu0 %v1391_v31, %s903_s10  ;;  %495 = vrot.lane.b32.xlu1 %v1395_v9, %s903_s10 }
 0x2a9   :  { %627 = vperm.xlu0 %797, %v66_v43  }
 0x2fb   :  { %v590_v18 = vpop.permute.xlu0 %589  ;;  %v592_v10 = vpop.permute.xlu1 %591 }
 0x2fc   :  { %v599_v22 = vsel %vm143_vm2, %v590_v18, %v592_v10 }
 0x2fd   :  { %v601_v63 = vmul.f32 %v1088_v38, %v599_v22 }
 0x2ff   :  { %v594_v17 = vpop.permute.xlu0 %593  ;;  %v596_v21 = vpop.permute.xlu1 %595  ;;  %v621_v0 = vpack.c.bf16 %v601_v63, %v601_v63 }
 0x300   :  { %v598_v43 = vsel %vm143_vm2, %v592_v10, %v594_v17  ;;  %v597_v2 = vsel %vm143_vm2, %v594_v17, %v596_v21  ;;  %v600_v3 = vsel %vm143_vm2, %v596_v21, %v590_v18  ;;  %v550_v10 = vsel %vm143_vm2, %v544_v13, %v546_v45 }
 0x301   :  { %v602_v1 = vmul.f32 %v1122_v54, %v598_v43  ;;  %v603_v25 = vmul.f32 %v1120_v53, %v597_v2  ;;  %v604_v48 = vmul.f32 %v1124_v55, %v600_v3  ;;  %v586_v18 = vmul.f32 %v566_v34, %v1104_v47 }
 0x302   :  { %v585_v3 = vmul.f32 %v1355_v42, %v1101_v46  ;;  %v588_v53 = vmul.f32 %v568_v39, %v1111_v50  ;;  %v552_v54 = vsel %vm143_vm2, %v548_v12, %v542_v20  ;;  %v587_v47 = vmul.f32 %v1366_v40, %v1108_v49 }
 0x303   :  { %v622_v36 = vpack.c.bf16 %v602_v1, %v602_v1  ;;  %v623_v38 = vpack.c.bf16 %v603_v25, %v603_v25  ;;  %v624_v22 = vpack.c.bf16 %v604_v48, %v604_v48  ;;  %v570_v9 = vpop.permute.xlu0 %569  ;;  %v572_v8 = vpop.permute.xlu1 %571  ;;  %v634_v1 = vsel %vm358_vm4, %v621_v0, 0 }
 0x304   :  { %v579_v17 = vsel %vm90_vm3, %v570_v9, %v572_v8  ;;  %v551_v55 = vsel %vm143_vm2, %v542_v20, %v544_v13  ;;  %v554_v0 = vmul.f32 %v550_v10, %v1127_v56  ;;  %v549_v46 = vsel %vm143_vm2, %v546_v45, %v548_v12 }
 0x305   :  { %v582_v63 = vmul.f32 %v579_v17, %v1145_v6  ;;  %783 = vmatprep.subr.msk.bf16.mxu0 %vm358_vm4, %v622_v36  ;;  %785 = vmatprep.subr.msk.bf16.mxu1 %vm358_vm4, %v624_v22  ;;  %v640_v2 = vsel %vm358_vm4, %v623_v38, 0  ;;  %v556_v42 = vmul.f32 %v552_v54, %v1133_v58  ;;  %v553_v40 = vmul.f32 %v551_v55, %v1118_v52 }
 0x306   :  { %652 = vmatpush1.bf16.msra.mxu0 %v634_v1  ;;  %693 = vmatpush1.bf16.msra.mxu1 %v640_v2  ;;  %v555_v20 = vmul.f32 %v549_v46, %v1130_v57  ;;  %v534_v58 = vsel %vm90_vm3, %v528_v32, %v1414_v28  ;;  %v1559_v46 = vld [vmem:[#allocation18_spill] sm:$0xff] }
 0x307   :  { %v574_v6 = vpop.permute.xlu0 %573  ;;  %v576_v48 = vpop.permute.xlu1 %575  ;;  %v618_v36 = vpack.c.bf16 %v586_v18, %v582_v63  ;;  %v616_v57 = vpack.c.bf16 %v556_v42, %v1327_v7  ;;  %v539_v43 = vmul.f32 %v534_v58, %v1151_v15  ;;  %v536_v7 = vsel %vm90_vm3, %v1416_v27, %v1412_v35 }
 0x308   :  { %v578_v50 = vsel %vm90_vm3, %v572_v8, %v574_v6  ;;  %v577_v25 = vsel %vm90_vm3, %v574_v6, %v576_v48  ;;  %v580_v49 = vsel %vm90_vm3, %v576_v48, %v570_v9  ;;  %v533_v9 = vsel %vm90_vm3, %v1414_v28, %v1416_v27  ;;  %v1557_v48 = vld [vmem:[#allocation17_spill] sm:$0xff] }
 0x309   :  { %v583_v34 = vmul.f32 %v578_v50, %v1167_v61  ;;  %v581_v56 = vmul.f32 %v580_v49, %v1160_v44  ;;  %v584_v39 = vmul.f32 %v577_v25, %v1170_v41  ;;  %653 = vmatprep.subr.bf16.mxu0 %v618_v36  ;;  %v535_v44 = vsel %vm90_vm3, %v1412_v35, %v528_v32 }
 0x30a   :  { %v614_v61 = vpack.c.bf16 %v554_v0, %v1321_v26  ;;  %v613_v41 = vpack.c.bf16 %v553_v40, %v1313_v24  ;;  %v615_v32 = vpack.c.bf16 %v555_v20, %v1315_v11  ;;  %v538_v26 = vmul.f32 %v535_v44, %v1136_v59  ;;  %v1556_v0 = vld [vmem:[#allocation19_spill] sm:$0xff] }
 0x30b   :  { %v619_v8 = vpack.c.bf16 %v587_v47, %v583_v34  ;;  %v617_v13 = vpack.c.bf16 %v585_v3, %v581_v56  ;;  %v510_v45 = vpop.permute.xlu0 %509  ;;  %v512_v12 = vpop.permute.xlu1 %511  ;;  %v620_v21 = vpack.c.bf16 %v588_v53, %v584_v39  ;;  %v540_v15 = vmul.f32 %v533_v9, %v1157_v19 }
 0x30c   :  { %v519_v52 = vsel %vm143_vm2, %v510_v45, %v512_v12  ;;  %v506_v19 = vmul.f32 %v1379_v4, %v1115_v51  ;;  %v505_v47 = vmul.f32 %v1383_v29, %v1266_v23  ;;  %v1555_v4 = vld [vmem:[#allocation15_spill] sm:$0xff] }
 0x30d   :  { %654 = vmatpush1.bf16.msra.mxu0 %v617_v13  ;;  %694 = vmatprep.subr.bf16.mxu1 %v620_v21  ;;  %v521_v22 = vmul.f32 %v519_v52, %v1213_v62  ;;  %v537_v62 = vmul.f32 %v536_v7, %v1154_v16  ;;  %v507_v16 = vmul.f32 %v1391_v31, %v1270_v37  ;;  %v1558_v31 = vld [vmem:[#allocation16_spill] sm:$0xff] }
 0x30e   :  { %655 = vmatprep.subr.bf16.mxu0 %v614_v61  ;;  %695 = vmatpush1.bf16.msra.mxu1 %v619_v8  ;;  %v508_v6 = vmul.f32 %v1556_v0, %v1555_v4 }
 0x30f   :  { %v514_v38 = vpop.permute.xlu0 %513  ;;  %696 = vmatprep.subr.bf16.mxu1 %v616_v57  ;;  %v516_v24 = vpop.permute.xlu1 %515  ;;  %v609_v3 = vpack.c.bf16 %v537_v62, %v521_v22 }
 0x310   :  { %v518_v28 = vsel %vm143_vm2, %v512_v12, %v514_v38  ;;  %v517_v11 = vsel %vm143_vm2, %v514_v38, %v516_v24  ;;  %v520_v59 = vsel %vm143_vm2, %v516_v24, %v510_v45 }
 0x311   :  { %v522_v10 = vmul.f32 %v518_v28, %v1230_v30  ;;  %v523_v35 = vmul.f32 %v517_v11, %v1236_v14  ;;  %v524_v27 = vmul.f32 %v520_v59, %v1216_v33  ;;  %656 = vmatpush1.bf16.msra.mxu0 %v613_v41 }
 0x312   :  { %697 = vmatpush1.bf16.msra.mxu1 %v615_v32 }
 0x313   :  { %v611_v17 = vpack.c.bf16 %v539_v43, %v523_v35  ;;  %v490_v18 = vpop.permute.xlu0 %489  ;;  %v492_v63 = vpop.permute.xlu1 %491  ;;  %v610_v1 = vpack.c.bf16 %v538_v26, %v522_v10  ;;  %v612_v2 = vpack.c.bf16 %v540_v15, %v524_v27 }
 0x314   :  { %v499_v53 = vsel %vm90_vm3, %v490_v18, %v492_v63 }
 0x315   :  { %v502_v30 = vmul.f32 %v499_v53, %v1244_v60  ;;  %657 = vmatprep.subr.bf16.mxu0 %v610_v1  ;;  %698 = vmatprep.subr.bf16.mxu1 %v612_v2  ;;  %v1561_v2 = vld [vmem:[#allocation11_spill] sm:$0xff] }
 0x316   :  { %658 = vmatpush1.bf16.msra.mxu0 %v609_v3  ;;  %699 = vmatpush1.bf16.msra.mxu1 %v611_v17 }
 0x317   :  { %v494_v33 = vpop.permute.xlu0 %493  ;;  %v496_v14 = vpop.permute.xlu1 %495  ;;  %v606_v54 = vpack.c.bf16 %v506_v19, %v502_v30  ;;  %v1562_v19 = vld [vmem:[#allocation14_spill] sm:$0xff] }
 0x318   :  { %v498_v55 = vsel %vm90_vm3, %v492_v63, %v494_v33  ;;  %v497_v51 = vsel %vm90_vm3, %v494_v33, %v496_v14  ;;  %v500_v60 = vsel %vm90_vm3, %v496_v14, %v490_v18  ;;  %v1560_v18 = vld [vmem:[#allocation12_spill] sm:$0xff] }
 0x319   :  { %v503_v37 = vmul.f32 %v498_v55, %v1557_v48  ;;  %v501_v36 = vmul.f32 %v500_v60, %v1558_v31  ;;  %v504_v50 = vmul.f32 %v497_v51, %v1559_v46  ;;  %659 = vmatprep.subr.bf16.mxu0 %v606_v54 }
 0x31b   :  { %v607_v23 = vpack.c.bf16 %v507_v16, %v503_v37  ;;  %v605_v29 = vpack.c.bf16 %v505_v47, %v501_v36  ;;  %v608_v25 = vpack.c.bf16 %v508_v6, %v504_v50  ;;  %v1563_v16 = vld [vmem:[#allocation13_spill] sm:$0xff] }
 0x31d   :  { %660 = vmatpush1.bf16.msra.mxu0 %v605_v29  ;;  %700 = vmatprep.subr.bf16.mxu1 %v608_v25 }
 0x31e   :  { %701 = vmatpush1.bf16.msra.mxu1 %v607_v23 }
 0x320   :  { %784 = vmatmul.mubr.msk.bf16.vlgmr.msra.gmra.mxu0 %vm354_vm5, %v65_v5 }
 0x321   :  { %786 = vmatmul.mubr.msk.bf16.vlgmr.msra.gmra.mxu1 %vm354_vm5, %v65_v5 }
 0x324   :  { %v628_v49 = vpop.permute.xlu0 %627 }
 0x3e0   :  { %v679_v42 = vpop.f32.mrf.mxu0 }
 0x3e1   :  { %v680_v34 = vadd.f32 %v679_v42, %v628_v49  ;;  %v720_v56 = vpop.f32.mrf.mxu1 }
 0x3e2   :  { %v721_v39 = vadd.f32 %v720_v56, %v628_v49  ;;  %v681_v40 = vpop.f32.mrf.mxu0 }
 0x3e3   :  { %v727_v20 = vsub.f32 0.0, %v680_v34  ;;  %v682_v8 = vadd.f32 %v681_v40, %v628_v49  ;;  %v722_v13 = vpop.f32.mrf.mxu1 }
 0x3e4   :  { %v729_v45 = vsub.f32 0.0, %v721_v39  ;;  %v723_v12 = vadd.f32 %v722_v13, %v628_v49  ;;  %v683_v21 = vpop.f32.mrf.mxu0 }
 0x3e5   :  { %v731_v58 = vmul.f32 1.442695, %v727_v20  ;;  %v728_v44 = vsub.f32 0.0, %v682_v8  ;;  %v724_v61 = vpop.f32.mrf.mxu1 }
 0x3e6   :  { %v735_v52 = vmul.f32 1.442695, %v729_v45  ;;  %v730_v57 = vsub.f32 0.0, %v723_v12  ;;  %v684_v41 = vpop.f32.mrf.mxu0 }
 0x3e7   :  { %814 = vpow2.f32 %v731_v58  ;;  %v733_v9 = vmul.f32 1.442695, %v728_v44  ;;  %v725_v32 = vpop.f32.mrf.mxu1 }
 0x3e8   :  { %816 = vpow2.f32 %v735_v52  ;;  %v737_v26 = vmul.f32 1.442695, %v730_v57 }
 0x3e9   :  { %818 = vpow2.f32 %v733_v9 }
 0x3ea   :  { %820 = vpow2.f32 %v737_v26 }
 0x3f4   :  { %v815_v43 = vpop.eup %814 }
 0x3f5   :  { %v817_v7 = vpop.eup %816  ;;  %v739_v38 = vadd.f32 1.0, %v815_v43 }
 0x3f6   :  { %v819_v24 = vpop.eup %818  ;;  %v741_v22 = vadd.f32 1.0, %v817_v7 }
 0x3f7   :  { %v821_v28 = vpop.eup %820  ;;  %822 = vrcp.f32 %v739_v38  ;;  %v740_v11 = vadd.f32 1.0, %v819_v24 }
 0x3f8   :  { %824 = vrcp.f32 %v741_v22  ;;  %v742_v59 = vadd.f32 1.0, %v821_v28 }
 0x3f9   :  { %826 = vrcp.f32 %v740_v11 }
 0x3fa   :  { %828 = vrcp.f32 %v742_v59 }
 0x404   :  { %v823_v15 = vpop.eup %822 }
 0x405   :  { %v825_v10 = vpop.eup %824  ;;  %v747_v35 = vmul.f32 %v823_v15, %v680_v34 }
 0x406   :  { %v827_v27 = vpop.eup %826  ;;  %v749_v62 = vmul.f32 %v825_v10, %v721_v39 }
 0x407   :  { %v829_v17 = vpop.eup %828  ;;  %v751_v63 = vadd.f32 %v747_v35, %v1560_v18  ;;  %v748_v1 = vmul.f32 %v827_v27, %v682_v8 }
 0x408   :  { %v753_v3 = vadd.f32 %v749_v62, %v1561_v2  ;;  %v750_v53 = vmul.f32 %v829_v17, %v723_v12 }
 0x409   :  { %755 = vst [vmem:[#allocation7] sm:$0xff] %v751_v63  ;;  %v752_v30 = vadd.f32 %v748_v1, %v1562_v19 }
 0x40a   :  { %757 = vst [vmem:[#allocation7 + $0x10] sm:$0xff] %v753_v3  ;;  %v754_v33 = vadd.f32 %v750_v53, %v1563_v16 }
 0x40b   :  { %756 = vst [vmem:[#allocation7 + $0x8] sm:$0xff] %v752_v30 }
 0x40c   :  { %758 = vst [vmem:[#allocation7 + $0x18] sm:$0xff] %v754_v33 }
 0x40d   :  { %881 = shalt.err (!%p878_p0)
}
 0x40e   :  { %768 = dma.vmem_to_hbm [thread:$0]  %s766_s16, 512, %s1536_s6, [#allocation4]  }
 0x40f   :  { %894 = dma.done.wait [#allocation4], 512  }
 0x410   :  { %895 = vsyncadd [#allocation4], 4294966784 }
 0x411   :  { %772 = vsyncpa [#allocation3], 1 }
 0x412   :  { %773 = vsyncpa [#allocation6], 1 }
 0x413   :  { %774 = vsyncpa [#allocation4], 1 }

</bundles_post_ra>
